<compile_context>
chip_gen: v6e
topology: v6e:2x2x1
jax: 0.10.0
libtpu: 0.0.40
codegen_flags: <defaults>
</compile_context>

<pallas_src>
import functools

import jax
import jax.numpy as jnp
from jax.experimental import pallas as pl
from jax.experimental.pallas import tpu as pltpu


def _glu_kernel(x_ref, w_ref, b_ref, o_ref, acc_ref, *, tn):
    # x_ref : (tm, tk)        input tile
    # w_ref : (tk, 2*tn)      fused weight tile: [value cols (mult_bias folded) | gate cols]
    # b_ref : (1, 2*tn)       fused bias tile (value bias already scaled by mult_bias)
    # o_ref : (tm, tn)        output tile
    # acc_ref: (tm, 2*tn) f32 accumulator, resident across the K axis
    k = pl.program_id(2)

    @pl.when(k == 0)
    def _init():
        acc_ref[...] = jnp.zeros_like(acc_ref)

    # Single fused MXU matmul producing both the value and gate halves of this N tile.
    acc_ref[...] += jnp.dot(x_ref[...], w_ref[...],
                            preferred_element_type=jnp.float32)

    @pl.when(k == pl.num_programs(2) - 1)
    def _finalize():
        y = acc_ref[...] + b_ref[...]          # f32 bias add
        xp = y[:, :tn]                         # value path (mult_bias already folded in)
        g = y[:, tn:]                          # gate path
        o_ref[...] = (xp * (g * jax.nn.sigmoid(g))).astype(o_ref.dtype)  # SiLU gate


def _pick_tile(dim, candidates, fallback):
    for c in candidates:
        if dim % c == 0:
            return c
    return fallback


def prepare_glu_params(w, b, mult_bias, *, tn=None, param_dtype=None):
    """One-time parameter prep (out of the per-call hot path).

    w: (2*dim_out, dim_in) in PyTorch nn.Linear layout; b: (2*dim_out,); mult_bias: (dim_out,).
    Returns (w_prep, b_prep, tn):
      w_prep: (dim_in, 2*dim_out), value/gate columns interleaved per N-tile of width tn,
              value columns pre-scaled by mult_bias.
      b_prep: (1, 2*dim_out) matching interleave, value bias pre-scaled by mult_bias.
    """
    two_dim_out, dim_in = w.shape
    dim_out = two_dim_out // 2
    if tn is None:
        tn = _pick_tile(dim_out, (512, 256, 128), dim_out)
    assert dim_out % tn == 0
    n_tiles = dim_out // tn

    wx = jnp.transpose(w[:dim_out, :]) * mult_bias[None, :]   # (dim_in, dim_out)
    wg = jnp.transpose(w[dim_out:, :])                        # (dim_in, dim_out)
    bx = b[:dim_out] * mult_bias
    bg = b[dim_out:]

    # Per N-tile j, columns are laid out as [value_j (tn) | gate_j (tn)] so one fused
    # (tk, 2*tn) weight block feeds a single dot per grid step.
    w_prep = jnp.stack(
        [wx.reshape(dim_in, n_tiles, tn), wg.reshape(dim_in, n_tiles, tn)], axis=2
    ).reshape(dim_in, 2 * dim_out)
    b_prep = jnp.stack(
        [bx.reshape(n_tiles, tn), bg.reshape(n_tiles, tn)], axis=1
    ).reshape(1, 2 * dim_out).astype(jnp.float32)

    if param_dtype is not None:   # e.g. jnp.bfloat16 on v6e/v7x for 2x MXU throughput
        w_prep = w_prep.astype(param_dtype)
    return w_prep, b_prep, tn


def glu_forward(x, w_prep, b_prep, tn, *, tm=256, tk=None, compute_dtype=None):
    """x: (..., dim_in). Returns (..., dim_out)."""
    orig_shape = x.shape
    dim_in = orig_shape[-1]
    dim_out = b_prep.shape[-1] // 2

    M = 1
    for d in orig_shape[:-1]:
        M *= d
    x2d = x.reshape(M, dim_in)
    if compute_dtype is not None:
        x2d = x2d.astype(compute_dtype)

    if tk is None:
        tk = _pick_tile(dim_in, (512, 256, 128), dim_in)

    # M tile: multiple of 8, at most the requested tm; pad M so any batch*seq works
    # with the MXU-friendly tile instead of falling back to tiny tiles.
    m_pad8 = ((M + 7) // 8) * 8
    tm = min(tm, m_pad8)
    M_pad = ((M + tm - 1) // tm) * tm
    if M_pad != M:
        x2d = jnp.pad(x2d, ((0, M_pad - M), (0, 0)))

    grid = (M_pad // tm, dim_out // tn, dim_in // tk)

    # Rough VMEM estimate (double-buffered inputs/outputs + f32 accumulator); raise the
    # scoped limit only when the 32 MiB default would be exceeded.
    in_itemsize = jnp.dtype(x2d.dtype).itemsize
    w_itemsize = jnp.dtype(w_prep.dtype).itemsize
    out_itemsize = jnp.dtype(x.dtype).itemsize
    vmem_est = (2 * (tm * tk * in_itemsize + tk * 2 * tn * w_itemsize
                     + 2 * tn * 4 + tm * tn * out_itemsize)
                + tm * 2 * tn * 4)
    compiler_kwargs = dict(dimension_semantics=("parallel", "parallel", "arbitrary"))
    if vmem_est > (32 << 20):
        compiler_kwargs["vmem_limit_bytes"] = min(int(vmem_est * 1.25), 100 << 20)

    out2d = pl.pallas_call(
        functools.partial(_glu_kernel, tn=tn),
        out_shape=jax.ShapeDtypeStruct((M_pad, dim_out), x.dtype),
        grid_spec=pltpu.PrefetchScalarGridSpec(
            num_scalar_prefetch=0,
            grid=grid,
            in_specs=[
                pl.BlockSpec((tm, tk), lambda i, j, k: (i, k)),
                pl.BlockSpec((tk, 2 * tn), lambda i, j, k: (k, j)),
                pl.BlockSpec((1, 2 * tn), lambda i, j, k: (0, j)),
            ],
            out_specs=pl.BlockSpec((tm, tn), lambda i, j, k: (i, j)),
            scratch_shapes=[pltpu.VMEM((tm, 2 * tn), jnp.float32)],
        ),
        compiler_params=pltpu.CompilerParams(**compiler_kwargs),
    )(x2d, w_prep, b_prep)

    if M_pad != M:
        out2d = out2d[:M]
    return out2d.reshape(*orig_shape[:-1], dim_out)


def glu_reference(x, w, b, mult_bias):
    proj = jnp.einsum("...d,od->...o", x, w) + b
    dim_out = w.shape[0] // 2
    xp, gate = proj[..., :dim_out], proj[..., dim_out:]
    return xp * (gate * jax.nn.sigmoid(gate)) * mult_bias


if __name__ == "__main__":
    key = jax.random.PRNGKey(0)
    B, S, dim_in = 2, 8, 32
    mult_dim = 2
    dim_out = dim_in * mult_dim  # inner_dim = 64

    k_x, k_w, k_b = jax.random.split(key, 3)
    x = jax.random.normal(k_x, (B, S, dim_in), dtype=jnp.float32)
    # Deterministic synthetic parameters (match nn.Linear(dim_in, dim_out*2) shapes).
    w = jax.random.normal(k_w, (dim_out * 2, dim_in), dtype=jnp.float32) * 0.05
    b = jax.random.normal(k_b, (dim_out * 2,), dtype=jnp.float32) * 0.05
    mult_bias = jnp.ones((dim_out,), dtype=jnp.float32)  # nn.Parameter(torch.ones(dim_out))

    # One-time prep: transpose, fold mult_bias, interleave value/gate columns per N-tile.
    w_prep, b_prep, tn = prepare_glu_params(w, b, mult_bias)

    out = glu_forward(x, w_prep, b_prep, tn)
    out = jax.block_until_ready(out)

    ref = glu_reference(x, w, b, mult_bias)
    assert out.shape == (B, S, dim_out)
    assert jnp.allclose(out, ref, atol=1e-5, rtol=1e-5)

    print("KERNEL_OK")
</pallas_src>

<mosaic_0001>
module attributes {stable_mosaic.version = 11 : i64} {
  func.func @_glu_kernel(%arg0: i32, %arg1: i32, %arg2: i32, %arg3: memref<16x32xf32, #tpu.memory_space<vmem>>, %arg4: memref<32x128xf32, #tpu.memory_space<vmem>>, %arg5: memref<1x128xf32, #tpu.memory_space<vmem>>, %arg6: memref<16x64xf32, #tpu.memory_space<vmem>>, %arg7: memref<16x128xf32, #tpu.memory_space<vmem>>) attributes {dimension_semantics = [#tpu.dimension_semantics<parallel>, #tpu.dimension_semantics<parallel>, #tpu.dimension_semantics<arbitrary>], iteration_bounds = array<i64: 1, 1, 1>, scalar_prefetch = 0 : i64, scratch_operands = 1 : i64, tpu.core_type = #tpu.core_type<tc>, window_params = [{transform_indices = @transform_0, window_bounds = array<i64: 16, 32>}, {transform_indices = @transform_1, window_bounds = array<i64: 32, 128>}, {transform_indices = @transform_2, window_bounds = array<i64: 1, 128>}, {transform_indices = @transform_3, window_bounds = array<i64: 16, 64>}]} {
    %c0_i32 = arith.constant 0 : i32
    %0 = arith.cmpi eq, %arg2, %c0_i32 : i32
    %1 = arith.extui %0 : i1 to i32
    %c0_i32_0 = arith.constant 0 : i32
    %2 = arith.cmpi ne, %1, %c0_i32_0 : i32
    scf.if %2 {
      %cst_10 = arith.constant 0.000000e+00 : f32
      %12 = vector.broadcast %cst_10 : f32 to vector<16x128xf32>
      %c0_11 = arith.constant 0 : index
      %c0_12 = arith.constant 0 : index
      %13 = vector.load %arg7[%c0_11, %c0_12] : memref<16x128xf32, #tpu.memory_space<vmem>>, vector<16x128xf32>
      tpu.vector_store %arg7[%c0_11, %c0_12], %12 {strides = array<i32>} : memref<16x128xf32, #tpu.memory_space<vmem>>, vector<16x128xf32>,
    } else {
    }
    %c0 = arith.constant 0 : index
    %c0_1 = arith.constant 0 : index
    %3 = vector.load %arg7[%c0, %c0_1] : memref<16x128xf32, #tpu.memory_space<vmem>>, vector<16x128xf32>
    %c0_2 = arith.constant 0 : index
    %c0_3 = arith.constant 0 : index
    %4 = vector.load %arg3[%c0_2, %c0_3] : memref<16x32xf32, #tpu.memory_space<vmem>>, vector<16x32xf32>
    %c0_4 = arith.constant 0 : index
    %c0_5 = arith.constant 0 : index
    %5 = vector.load %arg4[%c0_4, %c0_5] : memref<32x128xf32, #tpu.memory_space<vmem>>, vector<32x128xf32>
    %cst = arith.constant dense<0.000000e+00> : vector<16x128xf32>
    %6 = tpu.matmul %4, %5, %cst {dimension_numbers = #tpu.dot_dimension_numbers<[1], [0], [0], [1], [0, 0, 1, 1], [], []>} : vector<16x32xf32>, vector<32x128xf32>, vector<16x128xf32> -> vector<16x128xf32>
    %7 = arith.addf %3, %6 : vector<16x128xf32>
    %c0_6 = arith.constant 0 : index
    %c0_7 = arith.constant 0 : index
    %8 = vector.load %arg7[%c0_6, %c0_7] : memref<16x128xf32, #tpu.memory_space<vmem>>, vector<16x128xf32>
    tpu.vector_store %arg7[%c0_6, %c0_7], %7 {strides = array<i32>} : memref<16x128xf32, #tpu.memory_space<vmem>>, vector<16x128xf32>,
    %c0_i32_8 = arith.constant 0 : i32
    %9 = arith.cmpi eq, %arg2, %c0_i32_8 : i32
    %10 = arith.extui %9 : i1 to i32
    %c0_i32_9 = arith.constant 0 : i32
    %11 = arith.cmpi ne, %10, %c0_i32_9 : i32
    scf.if %11 {
      %c0_10 = arith.constant 0 : index
      %c0_11 = arith.constant 0 : index
      %12 = vector.load %arg7[%c0_10, %c0_11] : memref<16x128xf32, #tpu.memory_space<vmem>>, vector<16x128xf32>
      %c0_12 = arith.constant 0 : index
      %c0_13 = arith.constant 0 : index
      %13 = vector.load %arg5[%c0_12, %c0_13] : memref<1x128xf32, #tpu.memory_space<vmem>>, vector<1x128xf32>
      %14 = vector.broadcast %13 : vector<1x128xf32> to vector<16x128xf32>
      %15 = arith.addf %12, %14 : vector<16x128xf32>
      %16 = vector.extract_strided_slice %15 {offsets = [0, 0], sizes = [16, 64], strides = [1, 1]} : vector<16x128xf32> to vector<16x64xf32>
      %17 = vector.extract_strided_slice %15 {offsets = [0, 64], sizes = [16, 64], strides = [1, 1]} : vector<16x128xf32> to vector<16x64xf32>
      %18 = arith.negf %17 : vector<16x64xf32>
      %19 = math.exp %18 : vector<16x64xf32>
      %cst_14 = arith.constant 1.000000e+00 : f32
      %20 = vector.broadcast %cst_14 : f32 to vector<16x64xf32>
      %21 = arith.addf %20, %19 : vector<16x64xf32>
      %22 = arith.divf %20, %21 : vector<16x64xf32>
      %23 = arith.mulf %17, %22 : vector<16x64xf32>
      %24 = arith.mulf %16, %23 : vector<16x64xf32>
      %c0_15 = arith.constant 0 : index
      %c0_16 = arith.constant 0 : index
      %25 = vector.load %arg6[%c0_15, %c0_16] : memref<16x64xf32, #tpu.memory_space<vmem>>, vector<16x64xf32>
      tpu.vector_store %arg6[%c0_15, %c0_16], %24 {strides = array<i32>} : memref<16x64xf32, #tpu.memory_space<vmem>>, vector<16x64xf32>,
    } else {
    }
    return
  }
  func.func @transform_0(%arg0: i32, %arg1: i32, %arg2: i32) -> (i32, i32) {
    %c0_i32 = arith.constant 0 : i32
    return %arg0, %arg2 : i32, i32
  }
  func.func @transform_1(%arg0: i32, %arg1: i32, %arg2: i32) -> (i32, i32) {
    %c0_i32 = arith.constant 0 : i32
    return %arg2, %arg1 : i32, i32
  }
  func.func @transform_2(%arg0: i32, %arg1: i32, %arg2: i32) -> (i32, i32) {
    %c0_i32 = arith.constant 0 : i32
    %c0_i32_0 = arith.constant 0 : i32
    return %c0_i32, %arg1 : i32, i32
  }
  func.func @transform_3(%arg0: i32, %arg1: i32, %arg2: i32) -> (i32, i32) {
    %c0_i32 = arith.constant 0 : i32
    return %arg0, %arg1 : i32, i32
  }
}

</mosaic_0001>

<bundles_post_ra>
// kernel: tpu_custom_call.1
= control target key start
LH: loop header
LB: loop body
LE: loop exit
PB: predicated region body
PF: predicated region fallthrough
CT: control target
= control target key end

     0   :  { %8 = vsyncpa [#allocation4], 0  ;;  %s353_s0 = inlined_call_operand.hbm [shape: f32[16,32], index: 0, kind: input, shape index: {}]   ;;  %s354_s1 = inlined_call_operand.hbm [shape: f32[32,128], index: 1, kind: input, shape index: {}]   ;;  %s355_s2 = inlined_call_operand.vmem [shape: f32[1,128], index: 2, kind: input, shape index: {}]   ;;  %s356_s3 = inlined_call_operand.hbm [shape: f32[16,64], index: 3, kind: output, shape index: {}]  }
   0x1   :  { %9 = vsyncpa [#allocation7], 0 }
   0x2   :  { %10 = vsyncpa [#allocation5], 0  ;;  %s304_s12 = smov [#allocation3]  }
   0x3   :  { %s16_s13 = sshll.u32 %s304_s12, 4  ;;  %s17_s13 = int_to_ptr.vmem [resolvable:$true] %s16_s13 }
   0x4   :  { %s246_s14 = scalar_lea.vmem %s17_s13, 256  ;;  %p251_p1 = scmp.lt.s32.totalorder %s17_s13, %s17_s13 }
   0x5   :  { %p247_p0 = scmp.ne.s32.totalorder %s17_s13, %s246_s14  ;;  %p252_p2 = scmp.lt.s32.totalorder %s246_s14, %s246_s14 }
   0x7   :  { %p253_p3 = por %p252_p2, %p251_p1 }
   0x9   :  { %p254_p4 = pnand %p253_p3, %p247_p0 }
   0xb   :  { %257 = shalt.err (!%p254_p4)
}
   0xc   :  { %s305_s15 = smov 128   ;;  %s306_s16 = smov 8  }
   0xd   :  { %22 = dma.hbm_to_vmem [thread:$0]  %s353_s0, 256, %s17_s13, [#allocation4], %s305_s15, %s305_s15, %s306_s16  }
   0xe   :  { %s307_s19 = smov [#allocation6]  }
   0xf   :  { %s28_s20 = sshll.u32 %s307_s19, 4  ;;  %s29_s20 = int_to_ptr.vmem [resolvable:$true] %s28_s20 }
  0x10   :  { %s266_s21 = scalar_lea.vmem %s29_s20, 512  ;;  %p271_p6 = scmp.lt.s32.totalorder %s29_s20, %s29_s20 }
  0x11   :  { %p267_p5 = scmp.ne.s32.totalorder %s29_s20, %s266_s21  ;;  %p272_p7 = scmp.lt.s32.totalorder %s266_s21, %s266_s21 }
  0x13   :  { %p273_p8 = por %p272_p7, %p271_p6 }
  0x15   :  { %p274_p9 = pnand %p273_p8, %p267_p5 }
  0x17   :  { %277 = shalt.err (!%p274_p9)
}
  0x18   :  { %34 = dma.hbm_to_vmem [thread:$0]  %s354_s1, 512, %s29_s20, [#allocation7], %s305_s15, %s305_s15, %s306_s16  }
  0x19   :  { %298 = dma.done.wait [#allocation4], 256  }
  0x1a   :  { %299 = vsyncadd [#allocation4], 4294967040 }
  0x1b   :  { %300 = dma.done.wait [#allocation7], 512  }
  0x1c   :  { %301 = vsyncadd [#allocation7], 4294966784  ;;  %vm57_vm0 = vcmask 261120   ;;  %v56_v0 = vld [vmem:[#allocation6 + $0x18] sm:$0xff]  ;;  %v55_v1 = vld [vmem:[#allocation6 + $0x10] sm:$0xff]  ;;  %s308_s24 = smov 64  }
  0x1d   :  { %213 = vmatprep.subr.mxu0 %v56_v0  ;;  %v51_v2 = vld [vmem:[#allocation3] sm:$0xff]  ;;  %v54_v3 = vld [vmem:[#allocation6 + $0x8] sm:$0xff]  ;;  %v53_v4 = vld [vmem:[#allocation6] sm:$0xff]  ;;  %vm181_vm1 = vcmask 523264  }
  0x1e   :  { %214 = vmatpush3.msra.mxu0 %v56_v0  ;;  %221 = vmatprep.mubr.msk.f32.mxu0 %vm57_vm0, %v51_v2  ;;  %v52_v5 = vld [vmem:[#allocation3 + $0x8] sm:$0xff]  ;;  %v204_v6 = vld [vmem:[%s355_s2] ss:$0 sm:$0xff]  ;;  %s309_s2 = smov [#allocation8]  }
  0x1f   :  { %215 = vmatprep.subr.mxu0 %v55_v1  ;;  %s189_s25 = sshll.u32 %s309_s2, 4  ;;  %s190_s25 = int_to_ptr.vmem [resolvable:$true] %s189_s25 }
  0x20   :  { %216 = vmatpush3.msra.mxu0 %v55_v1  ;;  %s278_s26 = scalar_lea.vmem %s190_s25, 256  ;;  %p283_p11 = scmp.lt.s32.totalorder %s190_s25, %s190_s25 }
  0x21   :  { %217 = vmatprep.subr.mxu0 %v54_v3  ;;  %p279_p10 = scmp.ne.s32.totalorder %s190_s25, %s278_s26  ;;  %p284_p12 = scmp.lt.s32.totalorder %s278_s26, %s278_s26 }
  0x22   :  { %218 = vmatpush3.msra.mxu0 %v54_v3 }
  0x23   :  { %219 = vmatprep.subr.mxu0 %v53_v4  ;;  %p285_p13 = por %p284_p12, %p283_p11 }
  0x24   :  { %220 = vmatpush3.msra.mxu0 %v53_v4 }
  0x25   :  { %222 = vmatmul.mubr.msk.f32.vlgmr.msra.gmra.mxu0 %vm57_vm0, %v52_v5  ;;  %p286_p0 = pnand %p285_p13, %p279_p10 }
  0xe5   :  { %v223_v7 = vpop.f32.mrf.mxu0 }
  0xe6   :  { %v156_v8 = vadd.f32 %v223_v7, %v204_v6 }
  0xe7   :  { %v130_v9 = vpop.f32.mrf.mxu0 }
  0xe8   :  { %v206_v10 = vmul.f32 -1.442695, %v156_v8  ;;  %v155_v11 = vadd.f32 %v204_v6, %v130_v9 }
  0xea   :  { %230 = vpow2.f32 %v206_v10  ;;  %v205_v12 = vmul.f32 -1.442695, %v155_v11 }
  0xec   :  { %232 = vpow2.f32 %v205_v12 }
  0xf7   :  { %v231_v13 = vpop.eup %230 }
  0xf8   :  { %v164_v15 = vadd.f32 1.0, %v231_v13 }
  0xf9   :  { %v233_v14 = vpop.eup %232 }
  0xfa   :  { %v163_v16 = vadd.f32 1.0, %v233_v14 }
  0xfc   :  { %234 = vrcp.f32 %v163_v16 }
  0xfd   :  { %236 = vrcp.f32 %v164_v15 }
 0x109   :  { %v235_v17 = vpop.eup %234 }
 0x10a   :  { %v169_v18 = vmul.f32 %v235_v17, %v155_v11  ;;  %v237_v19 = vpop.eup %236 }
 0x10b   :  { %v170_v20 = vmul.f32 %v237_v19, %v156_v8 }
 0x10c   :  { %173 = vrot.lane.b32.xlu0 %v169_v18, %s308_s24 }
 0x110   :  { %175 = vrot.lane.b32.xlu0 %v170_v20, %s308_s24 }
 0x17e   :  { %v174_v21 = vpop.permute.xlu0 %173 }
 0x17f   :  { %v179_v22 = vmul.f32 %v174_v21, %v155_v11 }
 0x181   :  { %182 = vst.msk [vmem:[#allocation8] sm:$0xff] %vm181_vm1, %v179_v22 }
 0x182   :  { %v176_v23 = vpop.permute.xlu0 %175 }
 0x183   :  { %v180_v24 = vmul.f32 %v176_v23, %v156_v8 }
 0x185   :  { %183 = vst.msk [vmem:[#allocation8 + $0x8] sm:$0xff] %vm181_vm1, %v180_v24 }
 0x186   :  { %289 = shalt.err (!%p286_p0)
}
 0x187   :  { %195 = dma.vmem_to_hbm [thread:$0]  %s190_s25, 256, %s356_s3, [#allocation5], %s305_s15, %s305_s15, %s306_s16  }
 0x188   :  { %302 = dma.done.wait [#allocation5], 256  }
 0x189   :  { %303 = vsyncadd [#allocation5], 4294967040 }
 0x18a   :  { %199 = vsyncpa [#allocation4], 1 }
 0x18b   :  { %200 = vsyncpa [#allocation7], 1 }
 0x18c   :  { %201 = vsyncpa [#allocation5], 1 }

</bundles_post_ra>
